<compile_context>
chip_gen: v7x
topology: tpu7x:2x2x1
jax: 0.10.0
libtpu: 0.0.40
codegen_flags: <defaults>
</compile_context>

<pallas_src>
import math
import functools

import jax
import jax.numpy as jnp
from jax.experimental import pallas as pl
from jax.experimental.pallas import tpu as pltpu

NEG_INF = -1e30


# --------------------------------------------------------------------------
# Fused self-attention kernel: QKV projection + masked MHA, per batch element.
# --------------------------------------------------------------------------

def _self_attention_kernel(x_ref, wq_ref, wk_ref, wv_ref, m_ref, o_ref, *,
                           heads, scale):
    # x_ref block: (1, H, T) bf16, channels-first.  Squeeze the batch dim.
    x = x_ref[0]                                             # (H, T) bf16

    # 1x1-conv projections == weight @ x on the MXU (bf16 in, f32 accumulate).
    q = jnp.dot(wq_ref[...], x,
                preferred_element_type=jnp.float32).astype(jnp.bfloat16)   # (H, T)
    k = jnp.dot(wk_ref[...], x,
                preferred_element_type=jnp.float32).astype(jnp.bfloat16)   # (H, T)
    v = jnp.dot(wv_ref[...], x,
                preferred_element_type=jnp.float32).astype(jnp.bfloat16)   # (H, T)

    key_valid = m_ref[0] > 0.0                               # (1, T) bool key mask

    H = q.shape[0]
    d = H // heads
    outs = []
    # heads is small (1..8): static unroll; each head is a full-width MXU matmul.
    for h in range(heads):
        qh = q[h * d:(h + 1) * d, :]                         # (d, T)
        kh = k[h * d:(h + 1) * d, :]
        vh = v[h * d:(h + 1) * d, :]

        # s[t, t'] = sum_c qh[c, t] * kh[c, t']  -> (Tq, Tk), f32 accumulate.
        s = jax.lax.dot_general(qh, kh, (((0,), (0,)), ((), ())),
                                preferred_element_type=jnp.float32) * scale
        s = jnp.where(key_valid, s, NEG_INF)                 # mask keys
        s = s - jnp.max(s, axis=-1, keepdims=True)
        e = jnp.exp(s)
        denom = jnp.sum(e, axis=-1, keepdims=True)
        p = (e * pl.reciprocal(denom, approx=True)).astype(jnp.bfloat16)

        # out_h[c, t] = sum_t' p[t, t'] * vh[c, t']  -> (d, Tq), channels-first.
        outs.append(jax.lax.dot_general(vh, p, (((1,), (1,)), ((), ())),
                                        preferred_element_type=jnp.float32))

    # Single lane-dense full-block store of the concatenated heads: (H, T).
    o_ref[0] = jnp.concatenate(outs, axis=0)


def self_attention_forward(x, mask, params, *, heads):
    """x: (B, H, T) float32 (NCT, like torch Conv1d); mask: (B, T) {0,1}.

    Returns (B, H, T) float32, matching SelfAttention.forward in eval mode.
    """
    B, H, T = x.shape
    assert H % heads == 0, "hidden_size must be divisible by number_of_heads"
    d = H // heads
    scale = 1.0 / math.sqrt(d)

    # torch conv weights are (out, in, 1) -> here stored as (out, in).
    # Split mem_conv into its K / V halves once, outside the kernel.
    w_q = params["q_w"].astype(jnp.bfloat16)                 # (H, H)
    w_k = params["mem_w"][:H].astype(jnp.bfloat16)           # (H, H)
    w_v = params["mem_w"][H:].astype(jnp.bfloat16)           # (H, H)

    x_bf = x.astype(jnp.bfloat16)                            # halve HBM bytes in
    mask_f = mask.astype(jnp.float32).reshape(B, 1, T)

    kernel = functools.partial(_self_attention_kernel, heads=heads, scale=scale)

    return pl.pallas_call(
        kernel,
        grid=(B,),
        in_specs=[
            pl.BlockSpec((1, H, T), lambda b: (b, 0, 0)),    # x (per batch)
            pl.BlockSpec((H, H), lambda b: (0, 0)),          # W_q
            pl.BlockSpec((H, H), lambda b: (0, 0)),          # W_k
            pl.BlockSpec((H, H), lambda b: (0, 0)),          # W_v
            pl.BlockSpec((1, 1, T), lambda b: (b, 0, 0)),    # key mask
        ],
        out_specs=pl.BlockSpec((1, H, T), lambda b: (b, 0, 0)),
        out_shape=jax.ShapeDtypeStruct((B, H, T), jnp.float32),
        compiler_params=pltpu.CompilerParams(
            dimension_semantics=("parallel",)),              # shard batch over TCs
    )(x_bf, w_q, w_k, w_v, mask_f)


# --------------------------------------------------------------------------
# Pure-JAX reference (mirrors the PyTorch module, f32 math) for validation.
# --------------------------------------------------------------------------

def self_attention_reference(x, mask, params, heads):
    B, H, T = x.shape
    d = H // heads
    mem = jnp.einsum("oi,bit->bot", params["mem_w"], x)      # (B, 2H, T)
    qry = jnp.einsum("oi,bit->bot", params["q_w"], x)        # (B, H, T)
    mem_t = mem.transpose(0, 2, 1)                           # (B, T, 2H)
    qry_t = qry.transpose(0, 2, 1)                           # (B, T, H)
    Q = qry_t.reshape(B, T, heads, d).transpose(0, 2, 1, 3)
    K = mem_t[..., :H].reshape(B, T, heads, d).transpose(0, 2, 1, 3)
    V = mem_t[..., H:].reshape(B, T, heads, d).transpose(0, 2, 1, 3)
    att = jnp.einsum("bhqd,bhkd->bhqk", Q, K) / math.sqrt(d)
    m = mask.astype(jnp.float32).reshape(B, 1, 1, T)
    att = m * att + (1.0 - m) * NEG_INF                      # masked_softmax
    w = jax.nn.softmax(att, axis=-1)                         # dropout = identity (eval)
    out = jnp.einsum("bhqk,bhkd->bhqd", w, V)
    return out.transpose(0, 2, 1, 3).reshape(B, T, H).transpose(0, 2, 1)  # (B, H, T)


# --------------------------------------------------------------------------
# Smoke test.
# --------------------------------------------------------------------------

if __name__ == "__main__":
    B, H, T = 2, 32, 16                                      # hidden_size=32, seq=16

    key = jax.random.PRNGKey(0)
    kx, kw1, kw2 = jax.random.split(key, 3)
    x = jax.random.normal(kx, (B, H, T), jnp.float32)
    params = {
        "mem_w": 0.1 * jax.random.normal(kw1, (2 * H, H), jnp.float32),
        "q_w": 0.1 * jax.random.normal(kw2, (H, H), jnp.float32),
    }
    # Non-trivial key padding mask: second example has only 12 valid positions.
    lengths = jnp.array([T, 12])
    mask = (jnp.arange(T)[None, :] < lengths[:, None]).astype(jnp.float32)

    for heads in (1, 4):                                     # QAnet default (1) + multi-head
        out = self_attention_forward(x, mask, params, heads=heads)
        jax.block_until_ready(out)
        assert out.shape == (B, H, T)
        assert bool(jnp.all(jnp.isfinite(out)))
        ref = self_attention_reference(x, mask, params, heads)
        err = float(jnp.max(jnp.abs(out - ref)))
        assert err < 3e-2, f"heads={heads}: max abs err {err}"

    print("KERNEL_OK")
</pallas_src>

<mosaic_0001>
module attributes {stable_mosaic.version = 11 : i64} {
  func.func @_self_attention_kernel(%arg0: i32, %arg1: memref<1x32x16xbf16, #tpu.memory_space<vmem>>, %arg2: memref<32x32xbf16, #tpu.memory_space<vmem>>, %arg3: memref<32x32xbf16, #tpu.memory_space<vmem>>, %arg4: memref<32x32xbf16, #tpu.memory_space<vmem>>, %arg5: memref<1x1x16xf32, #tpu.memory_space<vmem>>, %arg6: memref<1x32x16xf32, #tpu.memory_space<vmem>>) attributes {dimension_semantics = [#tpu.dimension_semantics<parallel>], iteration_bounds = array<i64: 2>, scalar_prefetch = 0 : i64, scratch_operands = 0 : i64, tpu.core_type = #tpu.core_type<tc>, window_params = [{transform_indices = @transform_0, window_bounds = array<i64: 1, 32, 16>}, {pipeline_mode = #tpu.pipeline_mode<synchronous>, transform_indices = @transform_1, window_bounds = array<i64: 32, 32>}, {pipeline_mode = #tpu.pipeline_mode<synchronous>, transform_indices = @transform_2, window_bounds = array<i64: 32, 32>}, {pipeline_mode = #tpu.pipeline_mode<synchronous>, transform_indices = @transform_3, window_bounds = array<i64: 32, 32>}, {transform_indices = @transform_4, window_bounds = array<i64: 1, 1, 16>}, {transform_indices = @transform_5, window_bounds = array<i64: 1, 32, 16>}]} {
    %c0 = arith.constant 0 : index
    %c0_0 = arith.constant 0 : index
    %c0_1 = arith.constant 0 : index
    %0 = vector.load %arg1[%c0, %c0_0, %c0_1] : memref<1x32x16xbf16, #tpu.memory_space<vmem>>, vector<1x32x16xbf16>
    %1 = vector.shape_cast %0 : vector<1x32x16xbf16> to vector<32x16xbf16>
    %c0_2 = arith.constant 0 : index
    %c0_3 = arith.constant 0 : index
    %2 = vector.load %arg2[%c0_2, %c0_3] : memref<32x32xbf16, #tpu.memory_space<vmem>>, vector<32x32xbf16>
    %cst = arith.constant dense<0.000000e+00> : vector<32x16xf32>
    %3 = tpu.matmul %2, %1, %cst {dimension_numbers = #tpu.dot_dimension_numbers<[1], [0], [0], [1], [0, 0, 1, 1], [], []>} : vector<32x32xbf16>, vector<32x16xbf16>, vector<32x16xf32> -> vector<32x16xf32>
    %4 = arith.truncf %3 : vector<32x16xf32> to vector<32x16xbf16>
    %c0_4 = arith.constant 0 : index
    %c0_5 = arith.constant 0 : index
    %5 = vector.load %arg3[%c0_4, %c0_5] : memref<32x32xbf16, #tpu.memory_space<vmem>>, vector<32x32xbf16>
    %cst_6 = arith.constant dense<0.000000e+00> : vector<32x16xf32>
    %6 = tpu.matmul %5, %1, %cst_6 {dimension_numbers = #tpu.dot_dimension_numbers<[1], [0], [0], [1], [0, 0, 1, 1], [], []>} : vector<32x32xbf16>, vector<32x16xbf16>, vector<32x16xf32> -> vector<32x16xf32>
    %7 = arith.truncf %6 : vector<32x16xf32> to vector<32x16xbf16>
    %c0_7 = arith.constant 0 : index
    %c0_8 = arith.constant 0 : index
    %8 = vector.load %arg4[%c0_7, %c0_8] : memref<32x32xbf16, #tpu.memory_space<vmem>>, vector<32x32xbf16>
    %cst_9 = arith.constant dense<0.000000e+00> : vector<32x16xf32>
    %9 = tpu.matmul %8, %1, %cst_9 {dimension_numbers = #tpu.dot_dimension_numbers<[1], [0], [0], [1], [0, 0, 1, 1], [], []>} : vector<32x32xbf16>, vector<32x16xbf16>, vector<32x16xf32> -> vector<32x16xf32>
    %10 = arith.truncf %9 : vector<32x16xf32> to vector<32x16xbf16>
    %c0_10 = arith.constant 0 : index
    %c0_11 = arith.constant 0 : index
    %c0_12 = arith.constant 0 : index
    %11 = vector.load %arg5[%c0_10, %c0_11, %c0_12] : memref<1x1x16xf32, #tpu.memory_space<vmem>>, vector<1x1x16xf32>
    %12 = vector.shape_cast %11 : vector<1x1x16xf32> to vector<1x16xf32>
    %cst_13 = arith.constant 0.000000e+00 : f32
    %13 = vector.broadcast %cst_13 : f32 to vector<1x16xf32>
    %14 = arith.cmpf ogt, %12, %13 : vector<1x16xf32>
    %cst_14 = arith.constant dense<0.000000e+00> : vector<16x16xf32>
    %15 = tpu.matmul %4, %7, %cst_14 {dimension_numbers = #tpu.dot_dimension_numbers<[0], [0], [1], [1], [0, 1, 1, 1], [], []>} : vector<32x16xbf16>, vector<32x16xbf16>, vector<16x16xf32> -> vector<16x16xf32>
    %cst_15 = arith.constant 0.176776692 : f32
    %16 = vector.broadcast %cst_15 : f32 to vector<16x16xf32>
    %17 = arith.mulf %15, %16 : vector<16x16xf32>
    %cst_16 = arith.constant -1.000000e+30 : f32
    %18 = vector.shape_cast %14 : vector<1x16xi1> to vector<1x16xi1>
    %19 = vector.broadcast %18 : vector<1x16xi1> to vector<16x16xi1>
    %20 = vector.broadcast %cst_16 : f32 to vector<16x16xf32>
    %21 = arith.select %19, %17, %20 : vector<16x16xi1>, vector<16x16xf32>
    %cst_17 = arith.constant dense<0xFF800000> : vector<16xf32>
    %22 = vector.multi_reduction <maximumf>, %21, %cst_17 [1] : vector<16x16xf32> to vector<16xf32>
    %23 = vector.shape_cast %22 : vector<16xf32> to vector<16x1xf32>
    %24 = vector.broadcast %23 : vector<16x1xf32> to vector<16x16xf32>
    %25 = arith.subf %21, %24 : vector<16x16xf32>
    %26 = math.exp %25 : vector<16x16xf32>
    %cst_18 = arith.constant dense<0.000000e+00> : vector<16xf32>
    %27 = vector.multi_reduction <add>, %26, %cst_18 [1] : vector<16x16xf32> to vector<16xf32>
    %28 = vector.shape_cast %27 : vector<16xf32> to vector<16x1xf32>
    %29 = tpu.reciprocal %28 {approx = true} : vector<16x1xf32> -> vector<16x1xf32>
    %30 = vector.broadcast %29 : vector<16x1xf32> to vector<16x16xf32>
    %31 = arith.mulf %26, %30 : vector<16x16xf32>
    %32 = arith.truncf %31 : vector<16x16xf32> to vector<16x16xbf16>
    %cst_19 = arith.constant dense<0.000000e+00> : vector<32x16xf32>
    %33 = tpu.matmul %10, %32, %cst_19 {dimension_numbers = #tpu.dot_dimension_numbers<[1], [1], [0], [0], [0, 0, 1, 0], [], []>} : vector<32x16xbf16>, vector<16x16xbf16>, vector<32x16xf32> -> vector<32x16xf32>
    %c0_20 = arith.constant 0 : index
    %c0_21 = arith.constant 0 : index
    %c0_22 = arith.constant 0 : index
    %34 = vector.load %arg6[%c0_20, %c0_21, %c0_22] : memref<1x32x16xf32, #tpu.memory_space<vmem>>, vector<1x32x16xf32>
    %35 = vector.shape_cast %34 : vector<1x32x16xf32> to vector<32x16xf32>
    %36 = vector.shape_cast %33 : vector<32x16xf32> to vector<1x32x16xf32>
    tpu.vector_store %arg6[%c0_20, %c0_21, %c0_22], %36 {strides = array<i32>} : memref<1x32x16xf32, #tpu.memory_space<vmem>>, vector<1x32x16xf32>,
    return
  }
  func.func @transform_0(%arg0: i32) -> (i32, i32, i32) {
    %c0_i32 = arith.constant 0 : i32
    %c0_i32_0 = arith.constant 0 : i32
    %c0_i32_1 = arith.constant 0 : i32
    return %arg0, %c0_i32, %c0_i32_0 : i32, i32, i32
  }
  func.func @transform_1(%arg0: i32) -> (i32, i32) {
    %c0_i32 = arith.constant 0 : i32
    %c0_i32_0 = arith.constant 0 : i32
    %c0_i32_1 = arith.constant 0 : i32
    return %c0_i32, %c0_i32_0 : i32, i32
  }
  func.func @transform_2(%arg0: i32) -> (i32, i32) {
    %c0_i32 = arith.constant 0 : i32
    %c0_i32_0 = arith.constant 0 : i32
    %c0_i32_1 = arith.constant 0 : i32
    return %c0_i32, %c0_i32_0 : i32, i32
  }
  func.func @transform_3(%arg0: i32) -> (i32, i32) {
    %c0_i32 = arith.constant 0 : i32
    %c0_i32_0 = arith.constant 0 : i32
    %c0_i32_1 = arith.constant 0 : i32
    return %c0_i32, %c0_i32_0 : i32, i32
  }
  func.func @transform_4(%arg0: i32) -> (i32, i32, i32) {
    %c0_i32 = arith.constant 0 : i32
    %c0_i32_0 = arith.constant 0 : i32
    %c0_i32_1 = arith.constant 0 : i32
    return %arg0, %c0_i32, %c0_i32_0 : i32, i32, i32
  }
  func.func @transform_5(%arg0: i32) -> (i32, i32, i32) {
    %c0_i32 = arith.constant 0 : i32
    %c0_i32_0 = arith.constant 0 : i32
    %c0_i32_1 = arith.constant 0 : i32
    return %arg0, %c0_i32, %c0_i32_0 : i32, i32, i32
  }
}

</mosaic_0001>

<bundles_post_ra>
// kernel: tpu_custom_call.1
= control target key start
LH: loop header
LB: loop body
LE: loop exit
PB: predicated region body
PF: predicated region fallthrough
CT: control target
= control target key end

     0   :  { %s847_s18 = smov 0   ;;  %s909_s0 = inlined_call_operand.vmem [shape: bf16[2,32,16], index: 0, kind: input, shape index: {}]   ;;  %s910_s1 = inlined_call_operand.vmem [shape: bf16[32,32], index: 1, kind: input, shape index: {}]   ;;  %s911_s2 = inlined_call_operand.vmem [shape: bf16[32,32], index: 2, kind: input, shape index: {}]   ;;  %s912_s3 = inlined_call_operand.vmem [shape: bf16[32,32], index: 3, kind: input, shape index: {}]   ;;  %s913_s4 = inlined_call_operand.vmem [shape: f32[2,1,16], index: 4, kind: input, shape index: {}]   ;;  %s914_s5 = inlined_call_operand.vmem [shape: f32[2,32,16], index: 5, kind: output, shape index: {}]  }
   0x1 LB: > { %s692_s19 = sadd.s32 4294967295, %s812_s18   ;;  %p696_p0 = scmp.ge.s32.totalorder %s812_s18, 1  ;;  %s812_s18 = sphi %s847_s18, %s15_s18  }
   0x2   : > { %p195_p1 = scmp.lt.s32.totalorder %s812_s18, 3 }
   0x4   : > { %p196_p2 = pnand %p696_p0, %p195_p1 }
   0x5   : > { %p226_p3 = scmp.lt.s32.totalorder (!%p196_p2), %s692_s19, 1  ;;  %v792_v0 = vld [vmem:[%s910_s1] sm:$0xff] (!%p196_p2)   ;;  %vm270_vm0 = vcmask (!%p196_p2), 261120   ;;  %v793_v4 = vld [vmem:[%s910_s1 + $0x8] sm:$0xff] (!%p196_p2)   ;;  %v814_v6 = vmov (!%p196_p2), 0.0   ;;  %vm815_vm1 = vmmov (!%p196_p2), 0   ;;  %v535_v22 = vlaneseq (!%p196_p2) }
   0x6   : > { %199 = sbr.rel (%p196_p2) target bundleno = 1104 (0x450), region = 40  ;;  %744 = vmatprep.mubr.msk.bf16.mxu0 (!%p196_p2), %vm270_vm0, %v792_v0  ;;  %v794_v1 = vld [vmem:[%s911_s2] sm:$0xff] (!%p196_p2)   ;;  %v795_v5 = vld [vmem:[%s911_s2 + $0x8] sm:$0xff] (!%p196_p2)   ;;  %v816_v26 = vmov (!%p196_p2), 0   ;;  %vm542_vm4 = vcmask (!%p196_p2), 130048  }
   0x7   : > { %752 = vmatprep.mubr.msk.bf16.mxu1 (!%p196_p2), %vm270_vm0, %v794_v1  ;;  %v796_v20 = vld [vmem:[%s912_s3] sm:$0xff] (!%p196_p2)   ;;  %v797_v21 = vld [vmem:[%s912_s3 + $0x8] sm:$0xff] (!%p196_p2)   ;;  %v536_v24 = vshrl.u32 (!%p196_p2), %v535_v22, 7 }
   0x9   : > { %v537_v25 = vsub.s32 (!%p196_p2), 0, %v536_v24 }
   0xd   : > { %s916_s19 = smov (!%p226_p3, %s692_s19), 1 }
   0xe   : > { %s720_s24 = sshll.u32 %s916_s19, 4  ;;  %s233_s13 = scalar_lea.vmem %s913_s4, %s916_s19 }
   0xf   : > { %s230_s27 = scalar_lea.vmem %s909_s0, %s720_s24  ;;  %v470_v23 = vld [vmem:[%s233_s13] sm:$0x1]  ;;  %s721_s14 = sshll.u32 %s916_s19, 5 }
  0x10   : > { %v790_v2 = vld [vmem:[%s230_s27] sm:$0xff]   ;;  %v791_v3 = vld [vmem:[%s230_s27 + $0x8] sm:$0xff]   ;;  %vm471_vm2 = vcmp.gt.f32.partialorder %v470_v23, 0.0  ;;  %s238_s17 = scalar_lea.vmem %s914_s5, %s721_s14 }
  0x11   : > { %740 = vmatprep.subr.bf16.mxu0 %v790_v2  ;;  %748 = vmatprep.subr.bf16.mxu1 %v790_v2  ;;  %v534_v27 = vsel %vm471_vm2, 1, %v816_v26 }
  0x12   : > { %741 = vmatpush3.bf16.msra.mxu0 %v790_v2  ;;  %749 = vmatpush3.bf16.msra.mxu1 %v790_v2  ;;  %v538_v28 = vrot.slane %v534_v27, %v537_v25 }
  0x13   : > { %742 = vmatprep.subr.bf16.mxu0 %v791_v3  ;;  %750 = vmatprep.subr.bf16.mxu1 %v791_v3 }
  0x14   : > { %vm539_vm3 = vcmp.eq.s32.totalorder %v538_v28, 1 }
  0x16   : > { %743 = vmatpush3.bf16.msra.mxu0 %v791_v3  ;;  %751 = vmatpush3.bf16.msra.mxu1 %v791_v3 }
  0x17   : > { %756 = vmatprep.subr.bf16.mxu0 %v790_v2  ;;  %764 = vmatprep.subr.bf16.mxu1 %v814_v6 }
  0x19   : > { %745 = vmatmul.mubr.msk.bf16.vlgmr.msra.gmra.mrb[0].mxu0 %vm270_vm0, %v793_v4  ;;  %753 = vmatmul.mubr.msk.bf16.vlgmr.msra.gmra.mrb[0].mxu1 %vm270_vm0, %v795_v5 }
  0x1a   : > { %757 = vmatpush3.bf16.msra.mxu0 %v790_v2  ;;  %768 = vmatprep.mubr.msk.bf16.mxu1 %vm815_vm1, %v814_v6 }
  0x1b   : > { %758 = vmatprep.subr.bf16.mxu0 %v791_v3  ;;  %760 = vmatprep.mubr.msk.bf16.mxu0 %vm270_vm0, %v796_v20 }
  0x1e   : > { %759 = vmatpush3.bf16.msra.mxu0 %v791_v3 }
  0x21   : > { %761 = vmatmul.mubr.msk.bf16.vlgmr.msra.gmra.mrb[4].mxu0 %vm270_vm0, %v797_v21 }
  0xec   : > { %v746_v7 = vpop.f32.mrb[0].mxu0  ;;  %v754_v8 = vpop.f32.mrb[0].mxu1 }
  0xed   : > { %v311_v9 = vpop.f32.mrb[1].mxu0  ;;  %v382_v10 = vpop.f32.mrb[1].mxu1 }
  0xee   : > { %v747_v11 = vpop.f32.mrb[2].mxu0  ;;  %v755_v12 = vpop.f32.mrb[2].mxu1 }
  0xef   : > { %v327_v13 = vpack.c.bf16 %v747_v11, %v746_v7  ;;  %v314_v14 = vpop.f32.mrb[3].mxu0  ;;  %v398_v15 = vpack.c.bf16 %v755_v12, %v754_v8  ;;  %v385_v16 = vpop.f32.mrb[3].mxu1 }
  0xf0   : > { %v326_v17 = vpack.c.bf16 %v314_v14, %v311_v9  ;;  %v397_v18 = vpack.c.bf16 %v385_v16, %v382_v10 }
  0xf2   : > { %472 = vxpose.xlu0.c.b16.start [1/2] (short) (narrow) %v326_v17, 16  ;;  %765 = vmatpush3.bf16.msra.mxu1 %v397_v18 }
  0xf3   : > { %766 = vmatprep.subr.bf16.mxu1 %v814_v6 }
  0xf4   : > { %v762_v49 = vpop.f32.mrb[4].mxu0 }
  0xf5   : > { %v453_v50 = vpop.f32.mrb[5].mxu0 }
  0xf6   : > { %473 = vxpose.xlu0.c.b16.end [2/2] (short) (narrow) %v327_v13, 16  ;;  %767 = vmatpush3.bf16.msra.mxu1 %v398_v15  ;;  %v763_v51 = vpop.f32.mrb[6].mxu0 }
  0xf7   : > { %v469_v52 = vpack.c.bf16 %v763_v51, %v762_v49  ;;  %v456_v53 = vpop.f32.mrb[7].mxu0 }
  0xf8   : > { %v468_v54 = vpack.c.bf16 %v456_v53, %v453_v50 }
  0xfa   : > { %774 = vmatprep.mubr.msk.bf16.mxu0 %vm542_vm4, %v468_v54 }
 0x158   : > { %v480_v19 = vpop.trf.xlu0 }
 0x159   : > { %769 = vmatmul.mubr.msk.bf16.vlgmr.msra.gmra.mrb[4].mxu1 %vm270_vm0, %v480_v19 }
 0x22c   : > { %v525_v29 = vpop.f32.mrb[4].mxu1 }
 0x22d   : > { %v532_v30 = vmul.f32 0.17677669, %v525_v29  ;;  %v770_v31 = vpop.f32.mrb[5].mxu1 }
 0x22e   : > { %v528_v32 = vpop.f32.mrb[6].mxu1 }
 0x22f   : > { %v533_v33 = vmul.f32 0.17677669, %v528_v32  ;;  %v771_v34 = vpop.f32.mrb[7].mxu1  ;;  %v540_v35 = vsel %vm539_vm3, %v532_v30, -1e+30 }
 0x230   : > { %v543_v36 = vsel %vm542_vm4, %v540_v35, -inf }
 0x231   : > { %544 = vmax.xlane.f32.xlu1 %v543_v36  ;;  %v541_v37 = vsel %vm539_vm3, %v533_v33, -1e+30 }
 0x232   : > { %v546_v38 = vsel %vm542_vm4, %v541_v37, -inf }
 0x235   : > { %547 = vmax.xlane.f32.xlu1 %v546_v38 }
 0x2be   : > { %v545_v39 = vpop.xlane.xlu1 %544 }
 0x2bf   : > { %v549_v40 = vsub.f32 %v540_v35, %v545_v39 }
 0x2c1   : > { %v551_v41 = vmul.f32 1.442695, %v549_v40 }
 0x2c2   : > { %v548_v42 = vpop.xlane.xlu1 %547 }
 0x2c3   : > { %798 = vpow2.f32 %v551_v41  ;;  %v550_v43 = vsub.f32 %v541_v37, %v548_v42 }
 0x2c5   : > { %v553_v44 = vmul.f32 1.442695, %v550_v43 }
 0x2c7   : > { %800 = vpow2.f32 %v553_v44 }
 0x2cd   : > { %v799_v45 = vpop.eup %798 }
 0x2ce   : > { %v555_v46 = vsel %vm542_vm4, %v799_v45, 0.0 }
 0x2cf   : > { %556 = vadd.xlane.f32.xlu0 %v555_v46 }
 0x2d1   : > { %v801_v47 = vpop.eup %800 }
 0x2d2   : > { %v558_v48 = vsel %vm542_vm4, %v801_v47, 0.0 }
 0x2d3   : > { %559 = vadd.xlane.f32.xlu1 %v558_v48 }
 0x35c   : > { %v557_v55 = vpop.xlane.xlu0 %556 }
 0x35d   : > { %802 = vrcp.f32 %v557_v55 }
 0x360   : > { %v560_v56 = vpop.xlane.xlu1 %559 }
 0x361   : > { %804 = vrcp.f32 %v560_v56 }
 0x367   : > { %v803_v57 = vpop.eup %802 }
 0x368   : > { %v563_v59 = vmul.f32 %v803_v57, %v799_v45 }
 0x36b   : > { %v805_v58 = vpop.eup %804 }
 0x36c   : > { %v564_v60 = vmul.f32 %v805_v58, %v801_v47 }
 0x36e   : > { %v565_v61 = vpack.c.bf16 %v564_v60, %v563_v59 }
 0x370   : > { %778 = vmatprep.subr.msk.bf16.mxu0 %vm542_vm4, %v565_v61  ;;  %v573_v62 = vsel %vm542_vm4, %v565_v61, 0 }
 0x371   : > { %773 = vmatpush3.bf16.xpose.msra.mxu0 %v573_v62 }
 0x378   : > { %775 = vmatmul.mubr.msk.bf16.vlgmr.msra.gmra.mrb[8].mxu0 %vm542_vm4, %v469_v52 }
 0x44b   : > { %v776_v63 = vpop.f32.mrb[8].mxu0 }
 0x44c   : > { %626 = vst.msk [vmem:[%s238_s17 + $0x10] sm:$0xff] %vm542_vm4, %v776_v63  ;;  %v609_v0 = vpop.f32.mrb[9].mxu0 }
 0x44d   : > { %624 = vst.msk [vmem:[%s238_s17] sm:$0xff] %vm542_vm4, %v609_v0  ;;  %v777_v1 = vpop.f32.mrb[10].mxu0 }
 0x44e   : > { %627 = vst.msk [vmem:[%s238_s17 + $0x18] sm:$0xff] %vm542_vm4, %v777_v1  ;;  %v612_v2 = vpop.f32.mrb[11].mxu0 }
 0x44f   : > { %625 = vst.msk [vmem:[%s238_s17 + $0x8] sm:$0xff] %vm542_vm4, %v612_v2 }
 0x450 PF: > { %s15_s18 = sadd.s32 1, %s812_s18  }
 0x451   : > { %p12_p4 = scmp.ge.s32.totalorder %s15_s18, 4  }
 0x453   :  { %14 = sbr.rel (!%p12_p4) target bundleno = 1 (0x1), region = 73 }

</bundles_post_ra>
